<compile_context>
chip_gen: v6e
topology: v6e:2x2x1
jax: 0.10.0
libtpu: 0.0.40
codegen_flags: <defaults>
</compile_context>

<pallas_src>
import jax
import jax.numpy as jnp
from jax import lax
from jax.experimental import pallas as pl
from jax.experimental.pallas import tpu as pltpu

EPS = 1e-5


def _round_up(x, m):
    return ((x + m - 1) // m) * m


def prenorm_kernel(x_ref, g_ref, b_ref, w_ref, wb_ref, o_ref):
    # x_ref: (tm, D) tile of the flattened input.
    x = x_ref[...].astype(jnp.float32)
    d = x.shape[-1]
    inv_d = jnp.float32(1.0 / d)

    # --- LayerNorm over the last axis, single fused statistics pass ---
    s = jnp.sum(x, axis=-1, keepdims=True)
    s2 = jnp.sum(x * x, axis=-1, keepdims=True)
    mean = s * inv_d
    var = jnp.maximum(s2 * inv_d - mean * mean, 0.0)   # biased var, clamp fp noise
    xn = (x - mean) * lax.rsqrt(var + EPS)
    y = xn * g_ref[...] + b_ref[...]                   # gamma/beta broadcast (f32)

    # --- fn: Linear(D -> D) on the MXU, bf16 operands, f32 accumulation ---
    out = jnp.dot(y.astype(jnp.bfloat16), w_ref[...],
                  preferred_element_type=jnp.float32)
    out = out + wb_ref[...]
    o_ref[...] = out.astype(o_ref.dtype)


def prenorm_linear(x, gamma, beta, w, wb, *, tm=256):
    """x: (B, T, D). Returns fn(LayerNorm(x)) with fn = y @ w + wb."""
    B, T, D = x.shape
    rows = B * T
    x2 = x.reshape(rows, D)

    # Clamp the row tile to the (8-aligned) problem size, then pad the row
    # dimension so the grid divides evenly; padded rows are sliced off below.
    tm = max(8, min(tm, _round_up(rows, 8)))
    rows_p = _round_up(rows, tm)
    if rows_p != rows:
        x2 = jnp.pad(x2, ((0, rows_p - rows), (0, 0)))

    g2 = gamma.reshape(1, D).astype(jnp.float32)
    b2 = beta.reshape(1, D).astype(jnp.float32)
    wb2 = wb.reshape(1, D).astype(jnp.float32)
    w_bf16 = w.astype(jnp.bfloat16)                    # half the weight DMA/VMEM

    out = pl.pallas_call(
        prenorm_kernel,
        out_shape=jax.ShapeDtypeStruct((rows_p, D), x.dtype),
        grid_spec=pltpu.PrefetchScalarGridSpec(
            num_scalar_prefetch=0,
            grid=(rows_p // tm,),
            in_specs=[
                pl.BlockSpec((tm, D), lambda i: (i, 0)),   # x tile
                pl.BlockSpec((1, D), lambda i: (0, 0)),    # gamma (f32)
                pl.BlockSpec((1, D), lambda i: (0, 0)),    # beta  (f32)
                pl.BlockSpec((D, D), lambda i: (0, 0)),    # fn weight (bf16)
                pl.BlockSpec((1, D), lambda i: (0, 0)),    # fn bias (f32)
            ],
            out_specs=pl.BlockSpec((tm, D), lambda i: (i, 0)),
        ),
        compiler_params=pltpu.CompilerParams(
            dimension_semantics=("parallel",),             # shards rows across v7x TCs
            vmem_limit_bytes=64 * 1024 * 1024,
        ),
    )(x2, g2, b2, w_bf16, wb2)

    return out[:rows].reshape(B, T, D)


def prenorm_ref(x, gamma, beta, w, wb):
    """Pure-JAX reference matching the kernel's precision (bf16 MXU operands,
    f32 accumulation)."""
    xf = x.astype(jnp.float32)
    mean = jnp.mean(xf, axis=-1, keepdims=True)
    var = jnp.mean((xf - mean) ** 2, axis=-1, keepdims=True)
    y = (xf - mean) * lax.rsqrt(var + EPS) * gamma + beta
    out = jnp.dot(y.astype(jnp.bfloat16), w.astype(jnp.bfloat16),
                  preferred_element_type=jnp.float32) + wb
    return out.astype(x.dtype)


if __name__ == "__main__":
    # Small but lane-dense shapes: D is a multiple of 128 so output stores are
    # unmasked (D=32 would exercise the slow masked-vst path).
    B, T, D = 2, 8, 256
    key = jax.random.PRNGKey(0)
    kx, kg, kb, kw, kwb = jax.random.split(key, 5)

    x = jax.random.normal(kx, (B, T, D), dtype=jnp.float32)
    gamma = 1.0 + 0.1 * jax.random.normal(kg, (D,), dtype=jnp.float32)
    beta = 0.1 * jax.random.normal(kb, (D,), dtype=jnp.float32)
    w = jax.random.normal(kw, (D, D), dtype=jnp.float32) / jnp.sqrt(D)
    wb = 0.1 * jax.random.normal(kwb, (D,), dtype=jnp.float32)

    out = prenorm_linear(x, gamma, beta, w, wb)
    out = jax.block_until_ready(out)

    ref = prenorm_ref(x, gamma, beta, w, wb)
    assert out.shape == (B, T, D)
    assert bool(jnp.all(jnp.isfinite(out)))
    # bf16-matmul precision: compare against the precision-matched reference.
    assert jnp.allclose(out, ref, atol=2e-2, rtol=2e-2)

    print("KERNEL_OK")
</pallas_src>

<mosaic_0001>
module attributes {stable_mosaic.version = 11 : i64} {
  func.func @prenorm_kernel(%arg0: i32, %arg1: memref<16x256xf32, #tpu.memory_space<vmem>>, %arg2: memref<1x256xf32, #tpu.memory_space<vmem>>, %arg3: memref<1x256xf32, #tpu.memory_space<vmem>>, %arg4: memref<256x256xbf16, #tpu.memory_space<vmem>>, %arg5: memref<1x256xf32, #tpu.memory_space<vmem>>, %arg6: memref<16x256xf32, #tpu.memory_space<vmem>>) attributes {dimension_semantics = [#tpu.dimension_semantics<parallel>], iteration_bounds = array<i64: 1>, scalar_prefetch = 0 : i64, scratch_operands = 0 : i64, tpu.core_type = #tpu.core_type<tc>, window_params = [{transform_indices = @transform_0, window_bounds = array<i64: 16, 256>}, {pipeline_mode = #tpu.pipeline_mode<synchronous>, transform_indices = @transform_1, window_bounds = array<i64: 1, 256>}, {pipeline_mode = #tpu.pipeline_mode<synchronous>, transform_indices = @transform_2, window_bounds = array<i64: 1, 256>}, {pipeline_mode = #tpu.pipeline_mode<synchronous>, transform_indices = @transform_3, window_bounds = array<i64: 256, 256>}, {pipeline_mode = #tpu.pipeline_mode<synchronous>, transform_indices = @transform_4, window_bounds = array<i64: 1, 256>}, {transform_indices = @transform_5, window_bounds = array<i64: 16, 256>}]} {
    %c0 = arith.constant 0 : index
    %c0_0 = arith.constant 0 : index
    %0 = vector.load %arg1[%c0, %c0_0] : memref<16x256xf32, #tpu.memory_space<vmem>>, vector<16x256xf32>
    %cst = arith.constant dense<0.000000e+00> : vector<16xf32>
    %1 = vector.multi_reduction <add>, %0, %cst [1] : vector<16x256xf32> to vector<16xf32>
    %2 = vector.shape_cast %1 : vector<16xf32> to vector<16x1xf32>
    %3 = arith.mulf %0, %0 : vector<16x256xf32>
    %cst_1 = arith.constant dense<0.000000e+00> : vector<16xf32>
    %4 = vector.multi_reduction <add>, %3, %cst_1 [1] : vector<16x256xf32> to vector<16xf32>
    %5 = vector.shape_cast %4 : vector<16xf32> to vector<16x1xf32>
    %cst_2 = arith.constant 3.906250e-03 : f32
    %6 = vector.broadcast %cst_2 : f32 to vector<16x1xf32>
    %7 = arith.mulf %2, %6 : vector<16x1xf32>
    %cst_3 = arith.constant 3.906250e-03 : f32
    %8 = vector.broadcast %cst_3 : f32 to vector<16x1xf32>
    %9 = arith.mulf %5, %8 : vector<16x1xf32>
    %10 = arith.mulf %7, %7 : vector<16x1xf32>
    %11 = arith.subf %9, %10 : vector<16x1xf32>
    %cst_4 = arith.constant 0.000000e+00 : f32
    %12 = vector.broadcast %cst_4 : f32 to vector<16x1xf32>
    %13 = arith.maximumf %11, %12 : vector<16x1xf32>
    %14 = vector.broadcast %7 : vector<16x1xf32> to vector<16x256xf32>
    %15 = arith.subf %0, %14 : vector<16x256xf32>
    %cst_5 = arith.constant 9.99999974E-6 : f32
    %16 = vector.broadcast %cst_5 : f32 to vector<16x1xf32>
    %17 = arith.addf %13, %16 : vector<16x1xf32>
    %18 = math.rsqrt %17 : vector<16x1xf32>
    %19 = vector.broadcast %18 : vector<16x1xf32> to vector<16x256xf32>
    %20 = arith.mulf %15, %19 : vector<16x256xf32>
    %c0_6 = arith.constant 0 : index
    %c0_7 = arith.constant 0 : index
    %21 = vector.load %arg2[%c0_6, %c0_7] : memref<1x256xf32, #tpu.memory_space<vmem>>, vector<1x256xf32>
    %22 = vector.broadcast %21 : vector<1x256xf32> to vector<16x256xf32>
    %23 = arith.mulf %20, %22 : vector<16x256xf32>
    %c0_8 = arith.constant 0 : index
    %c0_9 = arith.constant 0 : index
    %24 = vector.load %arg3[%c0_8, %c0_9] : memref<1x256xf32, #tpu.memory_space<vmem>>, vector<1x256xf32>
    %25 = vector.broadcast %24 : vector<1x256xf32> to vector<16x256xf32>
    %26 = arith.addf %23, %25 : vector<16x256xf32>
    %27 = arith.truncf %26 : vector<16x256xf32> to vector<16x256xbf16>
    %c0_10 = arith.constant 0 : index
    %c0_11 = arith.constant 0 : index
    %28 = vector.load %arg4[%c0_10, %c0_11] : memref<256x256xbf16, #tpu.memory_space<vmem>>, vector<256x256xbf16>
    %cst_12 = arith.constant dense<0.000000e+00> : vector<16x256xf32>
    %29 = tpu.matmul %27, %28, %cst_12 {dimension_numbers = #tpu.dot_dimension_numbers<[1], [0], [0], [1], [0, 0, 1, 1], [], []>} : vector<16x256xbf16>, vector<256x256xbf16>, vector<16x256xf32> -> vector<16x256xf32>
    %c0_13 = arith.constant 0 : index
    %c0_14 = arith.constant 0 : index
    %30 = vector.load %arg5[%c0_13, %c0_14] : memref<1x256xf32, #tpu.memory_space<vmem>>, vector<1x256xf32>
    %31 = vector.broadcast %30 : vector<1x256xf32> to vector<16x256xf32>
    %32 = arith.addf %29, %31 : vector<16x256xf32>
    %c0_15 = arith.constant 0 : index
    %c0_16 = arith.constant 0 : index
    %33 = vector.load %arg6[%c0_15, %c0_16] : memref<16x256xf32, #tpu.memory_space<vmem>>, vector<16x256xf32>
    tpu.vector_store %arg6[%c0_15, %c0_16], %32 {strides = array<i32>} : memref<16x256xf32, #tpu.memory_space<vmem>>, vector<16x256xf32>,
    return
  }
  func.func @transform_0(%arg0: i32) -> (i32, i32) {
    %c0_i32 = arith.constant 0 : i32
    %c0_i32_0 = arith.constant 0 : i32
    return %arg0, %c0_i32 : i32, i32
  }
  func.func @transform_1(%arg0: i32) -> (i32, i32) {
    %c0_i32 = arith.constant 0 : i32
    %c0_i32_0 = arith.constant 0 : i32
    %c0_i32_1 = arith.constant 0 : i32
    return %c0_i32, %c0_i32_0 : i32, i32
  }
  func.func @transform_2(%arg0: i32) -> (i32, i32) {
    %c0_i32 = arith.constant 0 : i32
    %c0_i32_0 = arith.constant 0 : i32
    %c0_i32_1 = arith.constant 0 : i32
    return %c0_i32, %c0_i32_0 : i32, i32
  }
  func.func @transform_3(%arg0: i32) -> (i32, i32) {
    %c0_i32 = arith.constant 0 : i32
    %c0_i32_0 = arith.constant 0 : i32
    %c0_i32_1 = arith.constant 0 : i32
    return %c0_i32, %c0_i32_0 : i32, i32
  }
  func.func @transform_4(%arg0: i32) -> (i32, i32) {
    %c0_i32 = arith.constant 0 : i32
    %c0_i32_0 = arith.constant 0 : i32
    %c0_i32_1 = arith.constant 0 : i32
    return %c0_i32, %c0_i32_0 : i32, i32
  }
  func.func @transform_5(%arg0: i32) -> (i32, i32) {
    %c0_i32 = arith.constant 0 : i32
    %c0_i32_0 = arith.constant 0 : i32
    return %arg0, %c0_i32 : i32, i32
  }
}

</mosaic_0001>

<bundles_post_ra>
// kernel: tpu_custom_call.1
= control target key start
LH: loop header
LB: loop body
LE: loop exit
PB: predicated region body
PF: predicated region fallthrough
CT: control target
= control target key end

     0   :  { %10 = vsyncpa [#allocation3], 0  ;;  %s669_s0 = inlined_call_operand.hbm [shape: f32[16,256], index: 0, kind: input, shape index: {}]   ;;  %s670_s1 = inlined_call_operand.hbm [shape: f32[1,256], index: 1, kind: input, shape index: {}]   ;;  %s671_s2 = inlined_call_operand.vmem [shape: f32[1,256], index: 2, kind: input, shape index: {}]   ;;  %s672_s3 = inlined_call_operand.hbm [shape: bf16[256,256], index: 3, kind: input, shape index: {}]   ;;  %s673_s4 = inlined_call_operand.vmem [shape: f32[1,256], index: 4, kind: input, shape index: {}]   ;;  %s674_s5 = inlined_call_operand.hbm [shape: f32[16,256], index: 5, kind: output, shape index: {}]  }
   0x1   :  { %11 = vsyncpa [#allocation6], 0 }
   0x2   :  { %12 = vsyncpa [#allocation4], 0  ;;  %s583_s18 = smov [#allocation5]   ;;  %s584_s20 = smov [#allocation2]  }
   0x3   :  { %s31_s19 = sshll.u32 %s583_s18, 4  ;;  %s18_s21 = sshll.u32 %s584_s20, 4  ;;  %s32_s19 = int_to_ptr.vmem [resolvable:$true] %s31_s19  ;;  %s19_s21 = int_to_ptr.vmem [resolvable:$true] %s18_s21 }
   0x4   :  { %s505_s22 = scalar_lea.vmem %s32_s19, 32  ;;  %p510_p1 = scmp.lt.s32.totalorder %s32_s19, %s32_s19 }
   0x5   :  { %p506_p0 = scmp.ne.s32.totalorder %s32_s19, %s505_s22  ;;  %p511_p2 = scmp.lt.s32.totalorder %s505_s22, %s505_s22 }
   0x7   :  { %p512_p3 = por %p511_p2, %p510_p1 }
   0x9   :  { %p513_p4 = pnand %p512_p3, %p506_p0 }
   0xb   :  { %516 = shalt.err (!%p513_p4)
}
   0xc   :  { %34 = dma.hbm_to_vmem [thread:$0]  %s670_s1, 32, %s32_s19, [#allocation6]  }
   0xd   :  { %s525_s25 = scalar_lea.vmem %s19_s21, 512  ;;  %p530_p6 = scmp.lt.s32.totalorder %s19_s21, %s19_s21 }
   0xe   :  { %p526_p5 = scmp.ne.s32.totalorder %s19_s21, %s525_s25  ;;  %p531_p7 = scmp.lt.s32.totalorder %s525_s25, %s525_s25 }
  0x10   :  { %p532_p8 = por %p531_p7, %p530_p6 }
  0x12   :  { %p533_p9 = pnand %p532_p8, %p526_p5 }
  0x14   :  { %536 = shalt.err (!%p533_p9)
}
  0x15   :  { %s585_s26 = smov 256   ;;  %s586_s27 = smov 16  }
  0x16   :  { %24 = dma.hbm_to_vmem [thread:$0]  %s669_s0, 512, %s19_s21, [#allocation3], %s585_s26, %s585_s26, %s586_s27  }
  0x17   :  { %s587_s30 = smov [#allocation7]  }
  0x18   :  { %s42_s6 = sshll.u32 %s587_s30, 4  ;;  %s43_s6 = int_to_ptr.vmem [resolvable:$true] %s42_s6 }
  0x19   :  { %s545_s1 = scalar_lea.vmem %s43_s6, 4096  ;;  %p550_p11 = scmp.lt.s32.totalorder %s43_s6, %s43_s6 }
  0x1a   :  { %p546_p10 = scmp.ne.s32.totalorder %s43_s6, %s545_s1  ;;  %p551_p12 = scmp.lt.s32.totalorder %s545_s1, %s545_s1 }
  0x1c   :  { %p552_p13 = por %p551_p12, %p550_p11 }
  0x1e   :  { %p553_p0 = pnand %p552_p13, %p546_p10 }
  0x20   :  { %556 = shalt.err (!%p553_p0)
}
  0x21   :  { %s588_s7 = smov 128   ;;  %s589_s8 = smov 8  }
  0x22   :  { %48 = dma.hbm_to_vmem [thread:$0]  %s672_s3, 4096, %s43_s6, [#allocation6], %s588_s7, %s588_s7, %s589_s8  }
  0x23   :  { %577 = dma.done.wait [#allocation3], 512  }
  0x24   :  { %578 = vsyncadd [#allocation3], 4294966784 }
  0x25   :  { %579 = dma.done.wait [#allocation6], 4128  }
  0x26   :  { %580 = vsyncadd [#allocation6], 4294963168  ;;  %v633_v0 = vld [vmem:[#allocation2] sm:$0xff]  ;;  %v635_v1 = vld [vmem:[#allocation2 + $0x8] sm:$0xff]  ;;  %v104_v60 = vlaneseq  ;;  %s590_s12 = smov [#allocation8]  }
  0x27   :  { %v637_v2 = vld [vmem:[#allocation2 + $0x10] sm:$0xff]  ;;  %v64_v3 = vadd.f32 %v635_v1, %v633_v0  ;;  %v70_v4 = vmul.f32 %v633_v0, %v633_v0  ;;  %v71_v5 = vmul.f32 %v635_v1, %v635_v1  ;;  %v645_v6 = vld [vmem:[#allocation2 + $0x18] sm:$0xff]  ;;  %v450_v15 = vld [vmem:[#allocation7 + $0x60] ss:$8 sps:$4 sm:$0xff]   ;;  %s392_s13 = sshll.u32 %s590_s12, 4  ;;  %s393_s13 = int_to_ptr.vmem [resolvable:$true] %s392_s13 }
  0x28   :  { %v72_v7 = vmul.f32 %v637_v2, %v637_v2  ;;  %v73_v8 = vmul.f32 %v645_v6, %v645_v6  ;;  %v445_v9 = vld [vmem:[#allocation7 + $0x74] ss:$8 sps:$4 sm:$0xff]   ;;  %v447_v10 = vld [vmem:[#allocation7 + $0x70] ss:$8 sps:$4 sm:$0xff]   ;;  %v67_v12 = vadd.f32 %v645_v6, %v637_v2  ;;  %v448_v13 = vld [vmem:[#allocation7 + $0x64] ss:$8 sps:$4 sm:$0xff]   ;;  %p562_p2 = scmp.lt.s32.totalorder %s393_s13, %s393_s13 }
  0x29   :  { %65 = vadd.xlane.f32.xlu0 %v64_v3  ;;  %v74_v11 = vadd.f32 %v71_v5, %v70_v4  ;;  %340 = vmatprep.subr.bf16.mxu0 %v445_v9  ;;  %v451_v16 = vld [vmem:[#allocation7 + $0x54] ss:$8 sps:$4 sm:$0xff]   ;;  %v453_v17 = vld [vmem:[#allocation7 + $0x50] ss:$8 sps:$4 sm:$0xff]   ;;  %v454_v18 = vld [vmem:[#allocation7 + $0x44] ss:$8 sps:$4 sm:$0xff]  }
  0x2a   :  { %v77_v14 = vadd.f32 %v73_v8, %v72_v7  ;;  %341 = vmatpush1.bf16.msra.mxu0 %v447_v10  ;;  %v456_v19 = vld [vmem:[#allocation7 + $0x40] ss:$8 sps:$4 sm:$0xff]   ;;  %v457_v20 = vld [vmem:[#allocation7 + $0x34] ss:$8 sps:$4 sm:$0xff]   ;;  %v459_v21 = vld [vmem:[#allocation7 + $0x30] ss:$8 sps:$4 sm:$0xff]  }
  0x2b   :  { %75 = vadd.xlane.f32.xlu1 %v74_v11  ;;  %342 = vmatprep.subr.bf16.mxu0 %v448_v13  ;;  %v460_v22 = vld [vmem:[#allocation7 + $0x24] ss:$8 sps:$4 sm:$0xff]   ;;  %v462_v23 = vld [vmem:[#allocation7 + $0x20] ss:$8 sps:$4 sm:$0xff]   ;;  %v463_v24 = vld [vmem:[#allocation7 + $0x14] ss:$8 sps:$4 sm:$0xff]  }
  0x2c   :  { %v465_v25 = vld [vmem:[#allocation7 + $0x10] ss:$8 sps:$4 sm:$0xff]   ;;  %v466_v26 = vld [vmem:[#allocation7 + $0x4] ss:$8 sps:$4 sm:$0xff]   ;;  %v468_v27 = vld [vmem:[#allocation7] ss:$8 sps:$4 sm:$0xff]  }
  0x2d   :  { %68 = vadd.xlane.f32.xlu0 %v67_v12  ;;  %v469_v28 = vld [vmem:[#allocation7 + $0xf4] ss:$8 sps:$4 sm:$0xff]   ;;  %v471_v29 = vld [vmem:[#allocation7 + $0xf0] ss:$8 sps:$4 sm:$0xff]   ;;  %v472_v30 = vld [vmem:[#allocation7 + $0xe4] ss:$8 sps:$4 sm:$0xff]  }
  0x2e   :  { %343 = vmatpush1.bf16.msra.mxu0 %v450_v15  ;;  %v474_v31 = vld [vmem:[#allocation7 + $0xe0] ss:$8 sps:$4 sm:$0xff]   ;;  %v475_v32 = vld [vmem:[#allocation7 + $0xd4] ss:$8 sps:$4 sm:$0xff]   ;;  %v477_v33 = vld [vmem:[#allocation7 + $0xd0] ss:$8 sps:$4 sm:$0xff]  }
  0x2f   :  { %78 = vadd.xlane.f32.xlu1 %v77_v14  ;;  %344 = vmatprep.subr.bf16.mxu0 %v451_v16  ;;  %v478_v34 = vld [vmem:[#allocation7 + $0xc4] ss:$8 sps:$4 sm:$0xff]   ;;  %v480_v35 = vld [vmem:[#allocation7 + $0xc0] ss:$8 sps:$4 sm:$0xff]   ;;  %v481_v36 = vld [vmem:[#allocation7 + $0xb4] ss:$8 sps:$4 sm:$0xff]  }
  0x30   :  { %v483_v37 = vld [vmem:[#allocation7 + $0xb0] ss:$8 sps:$4 sm:$0xff]   ;;  %v484_v38 = vld [vmem:[#allocation7 + $0xa4] ss:$8 sps:$4 sm:$0xff]   ;;  %v486_v39 = vld [vmem:[#allocation7 + $0xa0] ss:$8 sps:$4 sm:$0xff]  }
  0x31   :  { %v487_v40 = vld [vmem:[#allocation7 + $0x94] ss:$8 sps:$4 sm:$0xff]   ;;  %v489_v41 = vld [vmem:[#allocation7 + $0x90] ss:$8 sps:$4 sm:$0xff]   ;;  %v490_v42 = vld [vmem:[#allocation7 + $0x84] ss:$8 sps:$4 sm:$0xff]  }
  0x32   :  { %345 = vmatpush1.bf16.msra.mxu0 %v453_v17  ;;  %v492_v43 = vld [vmem:[#allocation7 + $0x80] ss:$8 sps:$4 sm:$0xff]   ;;  %v105_v61 = vshrl.u32 %v104_v60, 7  ;;  %v102_v3 = vld [vmem:[#allocation5] sm:$0x3]  ;;  %s557_s14 = scalar_lea.vmem %s393_s13, 512 }
  0x33   :  { %346 = vmatprep.subr.bf16.mxu0 %v454_v18  ;;  %v118_v11 = vld [vmem:[%s671_s2] sm:$0x3]  ;;  %p558_p1 = scmp.ne.s32.totalorder %s393_s13, %s557_s14  ;;  %p563_p3 = scmp.lt.s32.totalorder %s557_s14, %s557_s14 }
  0x34   :  { %v106_v62 = vsub.s32 0, %v105_v61  ;;  %v110_v63 = vsub.s32 1, %v105_v61 }
  0x35   :  { %p564_p4 = por %p563_p3, %p562_p2 }
  0x36   :  { %347 = vmatpush1.bf16.msra.mxu0 %v456_v19  ;;  %v107_v9 = vrot.slane %v102_v3, %v106_v62  ;;  %v111_v10 = vrot.slane %v102_v3, %v110_v63  ;;  %v123_v16 = vrot.slane %v118_v11, %v106_v62  ;;  %v127_v17 = vrot.slane %v118_v11, %v110_v63 }
  0x37   :  { %348 = vmatprep.subr.bf16.mxu0 %v457_v20  ;;  %p565_p5 = pnand %p564_p4, %p558_p1 }
  0x3a   :  { %349 = vmatpush1.bf16.msra.mxu0 %v459_v21 }
  0x3b   :  { %350 = vmatprep.subr.bf16.mxu0 %v460_v22 }
  0x3e   :  { %351 = vmatpush1.bf16.msra.mxu0 %v462_v23 }
  0x3f   :  { %352 = vmatprep.subr.bf16.mxu0 %v463_v24 }
  0x42   :  { %353 = vmatpush1.bf16.msra.mxu0 %v465_v25 }
  0x43   :  { %354 = vmatprep.subr.bf16.mxu0 %v466_v26 }
  0x46   :  { %355 = vmatpush1.bf16.msra.mxu0 %v468_v27 }
  0x47   :  { %356 = vmatprep.subr.bf16.mxu0 %v469_v28 }
  0x4a   :  { %357 = vmatpush2.bf16.msra.mxu0 %v471_v29 }
  0x4b   :  { %358 = vmatprep.subr.bf16.mxu0 %v472_v30 }
  0x4e   :  { %359 = vmatpush2.bf16.msra.mxu0 %v474_v31 }
  0x4f   :  { %360 = vmatprep.subr.bf16.mxu0 %v475_v32 }
  0x52   :  { %361 = vmatpush2.bf16.msra.mxu0 %v477_v33 }
  0x53   :  { %362 = vmatprep.subr.bf16.mxu0 %v478_v34 }
  0x56   :  { %363 = vmatpush2.bf16.msra.mxu0 %v480_v35 }
  0x57   :  { %364 = vmatprep.subr.bf16.mxu0 %v481_v36 }
  0x5a   :  { %365 = vmatpush2.bf16.msra.mxu0 %v483_v37 }
  0x5b   :  { %366 = vmatprep.subr.bf16.mxu0 %v484_v38 }
  0x5e   :  { %367 = vmatpush2.bf16.msra.mxu0 %v486_v39 }
  0x5f   :  { %368 = vmatprep.subr.bf16.mxu0 %v487_v40 }
  0x62   :  { %369 = vmatpush2.bf16.msra.mxu0 %v489_v41 }
  0x63   :  { %370 = vmatprep.subr.bf16.mxu0 %v490_v42 }
  0x66   :  { %371 = vmatpush2.bf16.msra.mxu0 %v492_v43 }
  0xb2   :  { %v66_v44 = vpop.xlane.xlu0 %65 }
  0xb3   :  { %v80_v45 = vmul.f32 0.00390625, %v66_v44 }
  0xb4   :  { %v76_v46 = vpop.xlane.xlu1 %75 }
  0xb5   :  { %v82_v47 = vmul.f32 0.00390625, %v76_v46  ;;  %v84_v48 = vmul.f32 %v80_v45, %v80_v45  ;;  %v90_v5 = vsub.f32 %v633_v0, %v80_v45  ;;  %v91_v7 = vsub.f32 %v635_v1, %v80_v45 }
  0xb6   :  { %v69_v49 = vpop.xlane.xlu0 %68 }
  0xb7   :  { %v86_v50 = vsub.f32 %v82_v47, %v84_v48  ;;  %v81_v51 = vmul.f32 0.00390625, %v69_v49 }
  0xb8   :  { %v79_v52 = vpop.xlane.xlu1 %78 }
  0xb9   :  { %v88_v53 = vmax.f32 %v86_v50, 0.0  ;;  %v83_v54 = vmul.f32 0.00390625, %v79_v52  ;;  %v85_v55 = vmul.f32 %v81_v51, %v81_v51  ;;  %v92_v13 = vsub.f32 %v637_v2, %v81_v51  ;;  %v168_v2 = vld [vmem:[%s673_s4] sm:$0x3] }
  0xba   :  { %v93_v14 = vsub.f32 %v645_v6, %v81_v51  ;;  %v173_v6 = vrot.slane %v168_v2, %v106_v62  ;;  %v177_v28 = vrot.slane %v168_v2, %v110_v63 }
  0xbb   :  { %v94_v56 = vadd.f32 1e-05, %v88_v53  ;;  %v87_v57 = vsub.f32 %v83_v54, %v85_v55 }
  0xbd   :  { %493 = vrsqrt.f32 %v94_v56  ;;  %v89_v58 = vmax.f32 %v87_v57, 0.0 }
  0xbf   :  { %v95_v59 = vadd.f32 1e-05, %v89_v58 }
  0xc1   :  { %495 = vrsqrt.f32 %v95_v59 }
  0xca   :  { %v494_v4 = vpop.eup %493 }
  0xcb   :  { %v99_v8 = vmul.f32 %v494_v4, %v91_v7  ;;  %v98_v12 = vmul.f32 %v494_v4, %v90_v5 }
  0xcd   :  { %v115_v19 = vmul.f32 %v111_v10, %v99_v8  ;;  %v114_v20 = vmul.f32 %v107_v9, %v98_v12 }
  0xce   :  { %v496_v15 = vpop.eup %495 }
  0xcf   :  { %v101_v18 = vmul.f32 %v496_v15, %v93_v14  ;;  %v100_v0 = vmul.f32 %v496_v15, %v92_v13  ;;  %v131_v22 = vadd.f32 %v127_v17, %v115_v19  ;;  %v130_v24 = vadd.f32 %v123_v16, %v114_v20 }
  0xd1   :  { %v117_v1 = vmul.f32 %v111_v10, %v101_v18  ;;  %v116_v21 = vmul.f32 %v107_v9, %v100_v0 }
  0xd3   :  { %v133_v23 = vadd.f32 %v127_v17, %v117_v1  ;;  %v132_v25 = vadd.f32 %v123_v16, %v116_v21 }
  0xd5   :  { %v135_v26 = vpack.c.bf16 %v133_v23, %v131_v22  ;;  %v134_v27 = vpack.c.bf16 %v132_v25, %v130_v24 }
  0xd7   :  { %372 = vmatprep.mubr.bf16.mxu0 %v135_v26 }
  0xd8   :  { %373 = vmatmul.mubr.bf16.vlgmr.msra.gmra.mxu0 %v134_v27 }
 0x198   :  { %v374_v29 = vpop.f32.mrf.mxu0 }
 0x199   :  { %v375_v30 = vadd.f32 %v374_v29, %v173_v6 }
 0x19a   :  { %v376_v31 = vpop.f32.mrf.mxu0 }
 0x19b   :  { %383 = vst [vmem:[#allocation8] sm:$0xff] %v375_v30  ;;  %v377_v32 = vadd.f32 %v376_v31, %v177_v28 }
 0x19c   :  { %v378_v33 = vpop.f32.mrf.mxu0 }
 0x19d   :  { %384 = vst [vmem:[#allocation8 + $0x8] sm:$0xff] %v377_v32  ;;  %v379_v34 = vadd.f32 %v378_v33, %v173_v6 }
 0x19e   :  { %v380_v35 = vpop.f32.mrf.mxu0 }
 0x19f   :  { %385 = vst [vmem:[#allocation8 + $0x10] sm:$0xff] %v379_v34  ;;  %v381_v36 = vadd.f32 %v380_v35, %v177_v28 }
 0x1a1   :  { %386 = vst [vmem:[#allocation8 + $0x18] sm:$0xff] %v381_v36 }
 0x1a2   :  { %568 = shalt.err (!%p565_p5)
}
 0x1a3   :  { %398 = dma.vmem_to_hbm [thread:$0]  %s393_s13, 512, %s674_s5, [#allocation4], %s585_s26, %s585_s26, %s586_s27  }
 0x1a4   :  { %581 = dma.done.wait [#allocation4], 512  }
 0x1a5   :  { %582 = vsyncadd [#allocation4], 4294966784 }
 0x1a6   :  { %402 = vsyncpa [#allocation3], 1 }
 0x1a7   :  { %403 = vsyncpa [#allocation6], 1 }
 0x1a8   :  { %404 = vsyncpa [#allocation4], 1 }

</bundles_post_ra>
